<compile_context>
chip_gen: v7x
topology: tpu7x:2x2x1
jax: 0.10.0
libtpu: 0.0.40
codegen_flags: <defaults>
</compile_context>

<pallas_src>
import functools

import jax
import jax.numpy as jnp
from jax.experimental import pallas as pl
from jax.experimental.pallas import tpu as pltpu

LANE = 128
SUBLANE = 8


def _round_up(x, m):
    return ((x + m - 1) // m) * m


# ---------------------------------------------------------------------------
# Hardware probes (cached; safe fallbacks when a query is unavailable).
# ---------------------------------------------------------------------------
@functools.lru_cache(maxsize=1)
def _vmem_cap_bytes():
    """Generation-aware cap for vmem_limit_bytes (~75% of physical VMEM)."""
    try:
        phys = int(pltpu.get_tpu_info().vmem_capacity_bytes)
        return max(16 << 20, (phys * 3) // 4)
    except Exception:
        return 48 << 20  # safe under v7x's 64 MiB physical VMEM


@functools.lru_cache(maxsize=1)
def _mxu_pad_granularity():
    """256 on v6e/v7x (2x256x256 MXU), 128 on v5e (4x128x128) / unknown."""
    try:
        name = str(getattr(pltpu.get_tpu_info(), "chip_version", "")).lower()
        if "v6" in name or "v7" in name:
            return 256
    except Exception:
        pass
    return 128


@functools.lru_cache(maxsize=1)
def _single_buffer_ok():
    """Probe whether pipeline_mode=pl.Buffered(1) lowers on this jax/TPU.

    Weight/bias blocks have a constant index across the grid, so the default
    double-buffering only wastes VMEM; single-buffering them frees headroom
    for bigger row tiles / bigger resident hidden dims.
    """
    if not hasattr(pl, "Buffered"):
        return False
    try:
        def k(x_ref, o_ref):
            o_ref[...] = x_ref[...] + 1.0

        out = pl.pallas_call(
            k,
            out_shape=jax.ShapeDtypeStruct((SUBLANE, LANE), jnp.float32),
            grid=(2,),
            in_specs=[pl.BlockSpec((SUBLANE, LANE), lambda i: (0, 0),
                                   pipeline_mode=pl.Buffered(1))],
            out_specs=pl.BlockSpec((SUBLANE, LANE), lambda i: (0, 0)),
        )(jnp.zeros((SUBLANE, LANE), jnp.float32))
        jax.block_until_ready(out)
        return True
    except Exception:
        return False


def _param_spec(shape):
    """Resident (constant-index) parameter block, single-buffered if possible."""
    if _single_buffer_ok():
        return pl.BlockSpec(shape, lambda i: (0, 0),
                            pipeline_mode=pl.Buffered(1))
    return pl.BlockSpec(shape, lambda i: (0, 0))


def _pad_dim(d):
    if d <= LANE:
        return LANE
    return _round_up(d, _mxu_pad_granularity())


def _choose_tm(M):
    """Row-tile: as large as possible (streaming BW), <=~12.5% padded rows,
    and >= 2 grid steps whenever M allows (megacore sharding on v7x)."""
    M = max(int(M), 1)
    m8 = _round_up(M, SUBLANE)
    if m8 <= SUBLANE:
        return SUBLANE
    cands = {1024, 512, 384, 256, 128, 64, 32, 16, 8}
    for k in (2, 3, 4, 6, 8):
        cands.add(min(1024, _round_up(pl.cdiv(M, k), SUBLANE)))
    for tm in sorted(cands, reverse=True):
        if tm >= m8:  # would give a single grid step -> keep looking
            continue
        m_pad = _round_up(M, tm)
        if m_pad - M <= max(M // 8, SUBLANE):
            return tm
    return SUBLANE


# ---------------------------------------------------------------------------
# Fused MLP kernel: one row-tile of x through all layers, entirely in VMEM.
# ---------------------------------------------------------------------------
def _mlp_fused_kernel(*refs, num_layers):
    # refs = (x_ref, w0, b0, w1, b1, ..., w_{L-1}, b_{L-1}, o_ref)
    x_ref = refs[0]
    o_ref = refs[-1]

    h = x_ref[...].astype(jnp.float32)               # (tm, D0)
    for i in range(num_layers):
        w = refs[1 + 2 * i][...]                     # (Di, Dop), bf16
        b = refs[2 + 2 * i][...]                     # (1,  Dop), f32
        # MXU in the weights' dtype (bf16 ~2x MXU rate, half the footprint);
        # accumulate, bias-add and ReLU in f32 (v5e has no bf16 VPU ops).
        acc = jnp.dot(h.astype(w.dtype), w,
                      preferred_element_type=jnp.float32) + b
        h = jnp.maximum(acc, 0.0) if i < num_layers - 1 else acc
    o_ref[...] = h.astype(o_ref.dtype)


def _fused_mlp_pallas(x_rows, ws, bs, tm):
    """x_rows: (M_pad, D0) row-padded only; ws[i]: (Di, Dop); bs[i]: (1, Dop)."""
    M_pad, d0 = x_rows.shape
    num_layers = len(ws)
    out_p = ws[-1].shape[1]
    grid = (M_pad // tm,)

    in_specs = [pl.BlockSpec((tm, d0), lambda i: (i, 0))]
    for w, b in zip(ws, bs):
        in_specs.append(_param_spec(w.shape))
        in_specs.append(_param_spec(b.shape))
    out_specs = pl.BlockSpec((tm, out_p), lambda i: (i, 0))

    # VMEM budget: buffering-aware estimate with headroom, generation-aware cap.
    itemsize = x_rows.dtype.itemsize
    param_bytes = sum(w.size * w.dtype.itemsize + b.size * b.dtype.itemsize
                      for w, b in zip(ws, bs))
    bufs = 1 if _single_buffer_ok() else 2
    widest = max(w.shape[1] for w in ws)
    est = (2 * tm * d0 * itemsize          # double-buffered x tiles
           + 2 * tm * out_p * 4            # double-buffered out tiles
           + bufs * param_bytes            # resident params
           + 2 * tm * widest * 4)          # live f32 intermediates
    vmem_limit = int(min(max((est * 3) // 2, 16 << 20), _vmem_cap_bytes()))

    flops = 2 * M_pad * sum(w.shape[0] * w.shape[1] for w in ws)
    bytes_accessed = (x_rows.size * itemsize + param_bytes + M_pad * out_p * 4)
    cost = pl.CostEstimate(flops=flops, transcendentals=0,
                           bytes_accessed=bytes_accessed)

    kernel = functools.partial(_mlp_fused_kernel, num_layers=num_layers)

    args = [x_rows]
    for w, b in zip(ws, bs):
        args += [w, b]

    return pl.pallas_call(
        kernel,
        out_shape=jax.ShapeDtypeStruct((M_pad, out_p), x_rows.dtype),
        grid=grid,
        in_specs=in_specs,
        out_specs=out_specs,
        compiler_params=pltpu.CompilerParams(
            dimension_semantics=("parallel",),
            vmem_limit_bytes=vmem_limit,
        ),
        cost_estimate=cost,
    )(*args)


# ---------------------------------------------------------------------------
# Parameter construction / preparation
# ---------------------------------------------------------------------------
def init_mlp_params(key, input_dim, hidden_dim, output_dim, num_layers):
    """nn.Linear-style params: W (out, in), b (out,)."""
    h = [hidden_dim] * (num_layers - 1)
    dims_in = [input_dim] + h
    dims_out = h + [output_dim]
    params = []
    for n, k in zip(dims_in, dims_out):
        key, kw, kb = jax.random.split(key, 3)
        bound = 1.0 / jnp.sqrt(n)
        W = jax.random.uniform(kw, (k, n), jnp.float32, -bound, bound)
        bvec = jax.random.uniform(kb, (k,), jnp.float32, -bound, bound)
        params.append((W, bvec))
    return params


def prepare_params(params, *, weight_dtype=jnp.bfloat16):
    """Pre-transpose to (in, out), pad feature dims, cast weights — ONCE.

    * Layer 0 keeps its true input width, so x never needs lane padding in
      HBM; all other feature dims are padded to 128 (256 on v6e/v7x when
      > 128) so every resident block and the output store is lane-dense.
    * Weights go to bf16; biases stay f32 (bias-add/ReLU run on the f32 dot
      output).
    """
    _single_buffer_ok()  # warm the probe cache outside of jit
    ws, bs = [], []
    for li, (W, bvec) in enumerate(params):
        out_f, in_f = W.shape
        in_p = in_f if li == 0 else _pad_dim(in_f)
        out_p = _pad_dim(out_f)
        Wp = jnp.zeros((in_p, out_p), jnp.float32).at[:in_f, :out_f].set(W.T)
        bp = jnp.zeros((1, out_p), jnp.float32).at[0, :out_f].set(bvec)
        ws.append(Wp.astype(weight_dtype))
        bs.append(bp)
    return tuple(ws), tuple(bs)


# ---------------------------------------------------------------------------
# Forward pass
# ---------------------------------------------------------------------------
def mlp_forward(ws, bs, x, *, in_dim, out_dim):
    """x: (..., in_dim) -> (..., out_dim). ws/bs from prepare_params."""
    lead_shape = x.shape[:-1]
    x2d = x.reshape(-1, in_dim)
    M = x2d.shape[0]

    tm = _choose_tm(M)
    M_pad = _round_up(M, tm)
    if M_pad != M:
        x2d = jnp.pad(x2d, ((0, M_pad - M), (0, 0)))  # rows only, no lane pad

    out_padded = _fused_mlp_pallas(x2d, ws, bs, tm)
    # TODO(synk): for very large M, A/B an output block with last dim ==
    # out_dim (32x fewer HBM write bytes) vs this lane-dense padded store.
    out = out_padded[:M, :out_dim]
    return out.reshape(*lead_shape, out_dim)


def mlp_reference(params, x):
    """Plain-JAX f32 reference for correctness checking."""
    num_layers = len(params)
    for i, (W, bvec) in enumerate(params):
        x = x @ W.T + bvec
        if i < num_layers - 1:
            x = jnp.maximum(x, 0.0)
    return x


# ---------------------------------------------------------------------------
if __name__ == "__main__":
    key = jax.random.PRNGKey(0)

    # Small DETR-like shapes: (batch=2, num_queries=8, input_dim=16)
    input_dim, hidden_dim, output_dim, num_layers = 16, 32, 4, 3
    kx, kp = jax.random.split(key)
    x = jax.random.normal(kx, (2, 8, input_dim), jnp.float32)

    params = init_mlp_params(kp, input_dim, hidden_dim, output_dim, num_layers)
    ws, bs = prepare_params(params)  # padded + transposed + bf16, once

    forward = jax.jit(
        functools.partial(mlp_forward, in_dim=input_dim, out_dim=output_dim)
    )

    out = jax.block_until_ready(forward(ws, bs, x))

    ref = mlp_reference(params, x)
    assert out.shape == (2, 8, output_dim), out.shape
    # bf16 dot inputs with f32 accumulation: widen tolerance vs the f32 ref.
    err = float(jnp.max(jnp.abs(out - ref)))
    assert jnp.allclose(out, ref, atol=2e-2, rtol=2e-2), f"mismatch, max err {err}"

    print("KERNEL_OK")
</pallas_src>

<mosaic_0001>
module attributes {stable_mosaic.version = 11 : i64} {
  func.func @k(%arg0: i32, %arg1: memref<8x128xf32, #tpu.memory_space<vmem>>, %arg2: memref<8x128xf32, #tpu.memory_space<vmem>>) attributes {dimension_semantics = [#tpu.dimension_semantics<arbitrary>], iteration_bounds = array<i64: 2>, scalar_prefetch = 0 : i64, scratch_operands = 0 : i64, tpu.core_type = #tpu.core_type<tc>, window_params = [{pipeline_mode = #tpu.pipeline_mode<synchronous>, transform_indices = @transform_0, window_bounds = array<i64: 8, 128>}, {pipeline_mode = #tpu.pipeline_mode<synchronous>, transform_indices = @transform_1, window_bounds = array<i64: 8, 128>}]} {
    %c0 = arith.constant 0 : index
    %c0_0 = arith.constant 0 : index
    %0 = vector.load %arg1[%c0, %c0_0] : memref<8x128xf32, #tpu.memory_space<vmem>>, vector<8x128xf32>
    %cst = arith.constant 1.000000e+00 : f32
    %1 = vector.broadcast %cst : f32 to vector<8x128xf32>
    %2 = arith.addf %0, %1 : vector<8x128xf32>
    %c0_1 = arith.constant 0 : index
    %c0_2 = arith.constant 0 : index
    %3 = vector.load %arg2[%c0_1, %c0_2] : memref<8x128xf32, #tpu.memory_space<vmem>>, vector<8x128xf32>
    tpu.vector_store %arg2[%c0_1, %c0_2], %2 {strides = array<i32>} : memref<8x128xf32, #tpu.memory_space<vmem>>, vector<8x128xf32>,
    return
  }
  func.func @transform_0(%arg0: i32) -> (i32, i32) {
    %c0_i32 = arith.constant 0 : i32
    %c0_i32_0 = arith.constant 0 : i32
    %c0_i32_1 = arith.constant 0 : i32
    return %c0_i32, %c0_i32_0 : i32, i32
  }
  func.func @transform_1(%arg0: i32) -> (i32, i32) {
    %c0_i32 = arith.constant 0 : i32
    %c0_i32_0 = arith.constant 0 : i32
    %c0_i32_1 = arith.constant 0 : i32
    return %c0_i32, %c0_i32_0 : i32, i32
  }
}

module attributes {stable_mosaic.version = 11 : i64} {
  func.func @_mlp_fused_kernel(%arg0: i32, %arg1: memref<8x16xf32, #tpu.memory_space<vmem>>, %arg2: memref<16x128xbf16, #tpu.memory_space<vmem>>, %arg3: memref<1x128xf32, #tpu.memory_space<vmem>>, %arg4: memref<128x128xbf16, #tpu.memory_space<vmem>>, %arg5: memref<1x128xf32, #tpu.memory_space<vmem>>, %arg6: memref<128x128xbf16, #tpu.memory_space<vmem>>, %arg7: memref<1x128xf32, #tpu.memory_space<vmem>>, %arg8: memref<8x128xf32, #tpu.memory_space<vmem>>) attributes {dimension_semantics = [#tpu.dimension_semantics<parallel>], iteration_bounds = array<i64: 2>, scalar_prefetch = 0 : i64, scratch_operands = 0 : i64, tpu.core_type = #tpu.core_type<tc>, window_params = [{transform_indices = @transform_0, window_bounds = array<i64: 8, 16>}, {pipeline_mode = #tpu.pipeline_mode<synchronous>, transform_indices = @transform_1, window_bounds = array<i64: 16, 128>}, {pipeline_mode = #tpu.pipeline_mode<synchronous>, transform_indices = @transform_2, window_bounds = array<i64: 1, 128>}, {pipeline_mode = #tpu.pipeline_mode<synchronous>, transform_indices = @transform_3, window_bounds = array<i64: 128, 128>}, {pipeline_mode = #tpu.pipeline_mode<synchronous>, transform_indices = @transform_4, window_bounds = array<i64: 1, 128>}, {pipeline_mode = #tpu.pipeline_mode<synchronous>, transform_indices = @transform_5, window_bounds = array<i64: 128, 128>}, {pipeline_mode = #tpu.pipeline_mode<synchronous>, transform_indices = @transform_6, window_bounds = array<i64: 1, 128>}, {transform_indices = @transform_7, window_bounds = array<i64: 8, 128>}]} {
    %c0 = arith.constant 0 : index
    %c0_0 = arith.constant 0 : index
    %0 = vector.load %arg1[%c0, %c0_0] : memref<8x16xf32, #tpu.memory_space<vmem>>, vector<8x16xf32>
    %c0_1 = arith.constant 0 : index
    %c0_2 = arith.constant 0 : index
    %1 = vector.load %arg2[%c0_1, %c0_2] : memref<16x128xbf16, #tpu.memory_space<vmem>>, vector<16x128xbf16>
    %c0_3 = arith.constant 0 : index
    %c0_4 = arith.constant 0 : index
    %2 = vector.load %arg3[%c0_3, %c0_4] : memref<1x128xf32, #tpu.memory_space<vmem>>, vector<1x128xf32>
    %3 = arith.truncf %0 : vector<8x16xf32> to vector<8x16xbf16>
    %cst = arith.constant dense<0.000000e+00> : vector<8x128xf32>
    %4 = tpu.matmul %3, %1, %cst {dimension_numbers = #tpu.dot_dimension_numbers<[1], [0], [0], [1], [0, 0, 1, 1], [], []>} : vector<8x16xbf16>, vector<16x128xbf16>, vector<8x128xf32> -> vector<8x128xf32>
    %5 = vector.broadcast %2 : vector<1x128xf32> to vector<8x128xf32>
    %6 = arith.addf %4, %5 : vector<8x128xf32>
    %cst_5 = arith.constant 0.000000e+00 : f32
    %7 = vector.broadcast %cst_5 : f32 to vector<8x128xf32>
    %8 = arith.maximumf %6, %7 : vector<8x128xf32>
    %c0_6 = arith.constant 0 : index
    %c0_7 = arith.constant 0 : index
    %9 = vector.load %arg4[%c0_6, %c0_7] : memref<128x128xbf16, #tpu.memory_space<vmem>>, vector<128x128xbf16>
    %c0_8 = arith.constant 0 : index
    %c0_9 = arith.constant 0 : index
    %10 = vector.load %arg5[%c0_8, %c0_9] : memref<1x128xf32, #tpu.memory_space<vmem>>, vector<1x128xf32>
    %11 = arith.truncf %8 : vector<8x128xf32> to vector<8x128xbf16>
    %cst_10 = arith.constant dense<0.000000e+00> : vector<8x128xf32>
    %12 = tpu.matmul %11, %9, %cst_10 {dimension_numbers = #tpu.dot_dimension_numbers<[1], [0], [0], [1], [0, 0, 1, 1], [], []>} : vector<8x128xbf16>, vector<128x128xbf16>, vector<8x128xf32> -> vector<8x128xf32>
    %13 = vector.broadcast %10 : vector<1x128xf32> to vector<8x128xf32>
    %14 = arith.addf %12, %13 : vector<8x128xf32>
    %cst_11 = arith.constant 0.000000e+00 : f32
    %15 = vector.broadcast %cst_11 : f32 to vector<8x128xf32>
    %16 = arith.maximumf %14, %15 : vector<8x128xf32>
    %c0_12 = arith.constant 0 : index
    %c0_13 = arith.constant 0 : index
    %17 = vector.load %arg6[%c0_12, %c0_13] : memref<128x128xbf16, #tpu.memory_space<vmem>>, vector<128x128xbf16>
    %c0_14 = arith.constant 0 : index
    %c0_15 = arith.constant 0 : index
    %18 = vector.load %arg7[%c0_14, %c0_15] : memref<1x128xf32, #tpu.memory_space<vmem>>, vector<1x128xf32>
    %19 = arith.truncf %16 : vector<8x128xf32> to vector<8x128xbf16>
    %cst_16 = arith.constant dense<0.000000e+00> : vector<8x128xf32>
    %20 = tpu.matmul %19, %17, %cst_16 {dimension_numbers = #tpu.dot_dimension_numbers<[1], [0], [0], [1], [0, 0, 1, 1], [], []>} : vector<8x128xbf16>, vector<128x128xbf16>, vector<8x128xf32> -> vector<8x128xf32>
    %21 = vector.broadcast %18 : vector<1x128xf32> to vector<8x128xf32>
    %22 = arith.addf %20, %21 : vector<8x128xf32>
    %c0_17 = arith.constant 0 : index
    %c0_18 = arith.constant 0 : index
    %23 = vector.load %arg8[%c0_17, %c0_18] : memref<8x128xf32, #tpu.memory_space<vmem>>, vector<8x128xf32>
    tpu.vector_store %arg8[%c0_17, %c0_18], %22 {strides = array<i32>} : memref<8x128xf32, #tpu.memory_space<vmem>>, vector<8x128xf32>,
    return
  }
  func.func @transform_0(%arg0: i32) -> (i32, i32) {
    %c0_i32 = arith.constant 0 : i32
    %c0_i32_0 = arith.constant 0 : i32
    return %arg0, %c0_i32 : i32, i32
  }
  func.func @transform_1(%arg0: i32) -> (i32, i32) {
    %c0_i32 = arith.constant 0 : i32
    %c0_i32_0 = arith.constant 0 : i32
    %c0_i32_1 = arith.constant 0 : i32
    return %c0_i32, %c0_i32_0 : i32, i32
  }
  func.func @transform_2(%arg0: i32) -> (i32, i32) {
    %c0_i32 = arith.constant 0 : i32
    %c0_i32_0 = arith.constant 0 : i32
    %c0_i32_1 = arith.constant 0 : i32
    return %c0_i32, %c0_i32_0 : i32, i32
  }
  func.func @transform_3(%arg0: i32) -> (i32, i32) {
    %c0_i32 = arith.constant 0 : i32
    %c0_i32_0 = arith.constant 0 : i32
    %c0_i32_1 = arith.constant 0 : i32
    return %c0_i32, %c0_i32_0 : i32, i32
  }
  func.func @transform_4(%arg0: i32) -> (i32, i32) {
    %c0_i32 = arith.constant 0 : i32
    %c0_i32_0 = arith.constant 0 : i32
    %c0_i32_1 = arith.constant 0 : i32
    return %c0_i32, %c0_i32_0 : i32, i32
  }
  func.func @transform_5(%arg0: i32) -> (i32, i32) {
    %c0_i32 = arith.constant 0 : i32
    %c0_i32_0 = arith.constant 0 : i32
    %c0_i32_1 = arith.constant 0 : i32
    return %c0_i32, %c0_i32_0 : i32, i32
  }
  func.func @transform_6(%arg0: i32) -> (i32, i32) {
    %c0_i32 = arith.constant 0 : i32
    %c0_i32_0 = arith.constant 0 : i32
    %c0_i32_1 = arith.constant 0 : i32
    return %c0_i32, %c0_i32_0 : i32, i32
  }
  func.func @transform_7(%arg0: i32) -> (i32, i32) {
    %c0_i32 = arith.constant 0 : i32
    %c0_i32_0 = arith.constant 0 : i32
    return %arg0, %c0_i32 : i32, i32
  }
}

</mosaic_0001>

<bundles_post_ra>
// kernel: tpu_custom_call.1
= control target key start
LH: loop header
LB: loop body
LE: loop exit
PB: predicated region body
PF: predicated region fallthrough
CT: control target
= control target key end

     0   :  { %6 = vsyncpa [#allocation3], 0  ;;  %s341_s0 = inlined_call_operand.hbm [shape: f32[8,128], index: 0, kind: input, shape index: {}]   ;;  %s342_s1 = inlined_call_operand.hbm [shape: f32[8,128], index: 1, kind: output, shape index: {}]  }
   0x1   :  { %7 = vsyncpa [#allocation4], 0  ;;  %s262_s6 = smov 0  }
   0x2 LB: > { %s145_s7 = sadd.s32 4294967295, %s248_s6   ;;  %p146_p0 = scmp.ge.s32.totalorder %s248_s6, 1  ;;  %s248_s6 = sphi %s262_s6, %s13_s6  }
   0x3   : > { %p60_p1 = scmp.lt.s32.totalorder %s248_s6, 3  ;;  %p276_p3 = scmp.eq.s32.totalorder %s145_s7, 0 }
   0x4   : > { %s250_s10 = smov [#allocation2]   ;;  %s180_s15 = scalar_lea.hbm %s341_s0, 128 }
   0x5   : > { %p270_p2 = pnand %p146_p0, %p60_p1  ;;  %s73_s11 = sshll.u32 %s250_s10, 4  ;;  %s74_s11 = int_to_ptr.vmem [resolvable:$true] %s73_s11 }
   0x6   : > { %s347_s9 = scalar_select %p276_p3, 1, 0 }
   0x7   : > { %s346_s8 = scalar_select %p270_p2, 1, 0 }
   0x8   : > { %p162_p4 = pneg %p270_p2  ;;  %p181_p6 = scmp.ne.s32.totalorder %s341_s0, %s180_s15 }
   0x9   : > { %p187_p10 = scmp.lt.u32.totalorder %s180_s15, %s341_s0 }
   0xa   : > { %p284_p5 = pnand %p276_p3, %p162_p4 }
   0xc   : > { %p182_p7 = pneg %p284_p5 }
   0xe   : > { %p183_p8 = pnand %p182_p7, %p181_p6 }
  0x10   : > { %p184_p9 = pneg %p183_p8 }
  0x12   : > { %p189_p11 = pnand %p187_p10, %p184_p9 }
  0x14   : > { %192 = shalt.err (!%p189_p11)
}
  0x15   : > { %s193_s20 = scalar_lea.vmem %s74_s11, 128  ;;  %p201_p1 = scmp.lt.s32.totalorder %s74_s11, %s74_s11 }
  0x16   : > { %p194_p12 = scmp.ne.s32.totalorder %s74_s11, %s193_s20  ;;  %p202_p4 = scmp.lt.s32.totalorder %s193_s20, %s193_s20 }
  0x18   : > { %p196_p13 = pnand %p194_p12, %p182_p7  ;;  %p203_p3 = por %p202_p4, %p201_p1 }
  0x1a   : > { %p197_p0 = pneg %p196_p13 }
  0x1c   : > { %p204_p2 = pnand %p203_p3, %p197_p0 }
  0x1e   : > { %207 = shalt.err (!%p204_p2)
}
  0x1f   : > { %165 = dma.hbm_to_vmem [thread:$0]  (!%p284_p5), %s341_s0, 128, %s74_s11, [#allocation3]  }
  0x20   : > { %p349_p6 = scmp.ne.s32.totalorder %s346_s8, 0 }
  0x21   : > { %p350_p8 = scmp.ne.s32.totalorder (!%p349_p6), %s347_s9, 0 }
  0x22   : > { %86 = sbr.rel (%p349_p6) target bundleno = 67 (0x43), region = 24 }
  0x29   : > { %239 = dma.done.wait (%p350_p8), [#allocation3], 128  }
  0x2a   : > { %241 = vsyncadd (%p350_p8), [#allocation3], 4294967168  ;;  %s251_s23 = smov [#allocation5]   ;;  %v96_v0 = vld [vmem:[#allocation2] sm:$0xff]  ;;  %p312_p2 = scmp.eq.s32.totalorder %s145_s7, 1 }
  0x2b   : > { %s106_s24 = sshll.u32 %s251_s23, 4  ;;  %v97_v1 = vadd.f32 1.0, %v96_v0  ;;  %s107_s24 = int_to_ptr.vmem [resolvable:$true] %s106_s24 }
  0x2c   : > { %s208_s26 = scalar_lea.vmem %s107_s24, 128  ;;  %p215_p9 = scmp.lt.s32.totalorder %s107_s24, %s107_s24 }
  0x2d   : > { %98 = vst [vmem:[#allocation5] sm:$0xff] %v97_v1  ;;  %p209_p3 = scmp.ne.s32.totalorder %s107_s24, %s208_s26  ;;  %p216_p10 = scmp.lt.s32.totalorder %s208_s26, %s208_s26 }
  0x2f   : > { %p210_p5 = pnand %p209_p3, %p312_p2  ;;  %p217_p11 = por %p216_p10, %p215_p9 }
  0x31   : > { %p211_p7 = pneg %p210_p5 }
  0x33   : > { %p218_p12 = pnand %p217_p11, %p211_p7 }
  0x35   : > { %221 = shalt.err (!%p218_p12)
}
  0x36   : > { %s222_s29 = scalar_lea.hbm %s342_s1, 128 }
  0x37   : > { %p223_p13 = scmp.ne.s32.totalorder %s342_s1, %s222_s29  ;;  %p228_p4 = scmp.lt.u32.totalorder %s222_s29, %s342_s1 }
  0x39   : > { %p224_p0 = pnand %p223_p13, %p312_p2 }
  0x3b   : > { %p225_p1 = pneg %p224_p0 }
  0x3d   : > { %p230_p6 = pnand %p228_p4, %p225_p1 }
  0x3f   : > { %233 = shalt.err (!%p230_p6)
}
  0x40   : > { %159 = dma.vmem_to_hbm [thread:$0]  (%p312_p2), %s107_s24, 128, %s342_s1, [#allocation4]  }
  0x41   : > { %243 = dma.done.wait (%p312_p2), [#allocation4], 128  }
  0x42   : > { %245 = vsyncadd (%p312_p2), [#allocation4], 4294967168 }
  0x43 PF: > { %s13_s6 = sadd.s32 1, %s248_s6  }
  0x44   : > { %p10_p8 = scmp.ge.s32.totalorder %s13_s6, 4  }
  0x46   :  { %12 = sbr.rel (!%p10_p8) target bundleno = 2 (0x2), region = 53 }
  0x4d   :  { %119 = vsyncpa [#allocation3], 1 }
  0x4e   :  { %121 = vsyncpa [#allocation3 + $0x1], 1 }
  0x4f   :  { %122 = vsyncpa [#allocation4], 1 }
  0x50   :  { %124 = vsyncpa [#allocation4 + $0x1], 1 }

// kernel: mlp_forward.1
= control target key start
LH: loop header
LB: loop body
LE: loop exit
PB: predicated region body
PF: predicated region fallthrough
CT: control target
= control target key end

     0   :  { %12 = vsyncpa [#allocation3], 0  ;;  %s1166_s0 = inlined_call_operand.vmem [shape: f32[16,16], index: 0, kind: input, shape index: {}]   ;;  %s1167_s1 = inlined_call_operand.hbm [shape: bf16[16,128], index: 1, kind: input, shape index: {}]   ;;  %s1168_s2 = inlined_call_operand.vmem [shape: f32[1,128], index: 2, kind: input, shape index: {}]   ;;  %s1169_s3 = inlined_call_operand.hbm [shape: bf16[128,128], index: 3, kind: input, shape index: {}]   ;;  %s1170_s4 = inlined_call_operand.vmem [shape: f32[1,128], index: 4, kind: input, shape index: {}]   ;;  %s1171_s5 = inlined_call_operand.hbm [shape: bf16[128,128], index: 5, kind: input, shape index: {}]   ;;  %s1172_s6 = inlined_call_operand.vmem [shape: f32[1,128], index: 6, kind: input, shape index: {}]   ;;  %s1173_s7 = inlined_call_operand.vmem [shape: f32[16,128], index: 7, kind: output, shape index: {}]  }
   0x1   :  { %13 = vsyncpa [#allocation5], 0  ;;  %s1000_s24 = smov 0  }
   0x2 LB: > { %s1006_s25 = sadd.s32 4294967295, %s951_s24   ;;  %p693_p0 = scmp.ge.s32.totalorder %s951_s24, 1  ;;  %s951_s24 = sphi %s1000_s24, %s19_s24  }
   0x3   : > { %p202_p1 = scmp.lt.s32.totalorder %s951_s24, 3  ;;  %p1174_p2 = scmp.eq.s32.totalorder %s1006_s25, 0 }
   0x4   : > { %s953_s27 = smov [#allocation4]   ;;  %s954_s29 = smov [#allocation2]  }
   0x5   : > { %p1011_p3 = pnand %p693_p0, %p202_p1  ;;  %s230_s28 = sshll.u32 %s953_s27, 4  ;;  %s231_s28 = int_to_ptr.vmem [resolvable:$true] %s230_s28 }
   0x6   : > { %s214_s30 = sshll.u32 %s954_s29, 4  ;;  %s955_s9 = smov [#allocation6]   ;;  %s1023_s30 = int_to_ptr.vmem [resolvable:$true] %s214_s30 }
   0x7   : > { %s1176_s26 = scalar_select %p1011_p3, 1, 0 }
   0x8   : > { %p805_p4 = pneg %p1011_p3  ;;  %s246_s10 = sshll.u32 %s955_s9, 4  ;;  %s1025_s10 = int_to_ptr.vmem [resolvable:$true] %s246_s10 }
   0x9   : > { %s853_s13 = scalar_lea.hbm %s1169_s3, 1024 }
   0xa   : > { %p1019_p5 = pnand %p1174_p2, %p805_p4  ;;  %p854_p6 = scmp.ne.s32.totalorder %s1169_s3, %s853_s13 }
   0xb   : > { %p860_p10 = scmp.lt.u32.totalorder %s853_s13, %s1169_s3 }
   0xc   : > { %p1035_p7 = pneg %p1019_p5 }
   0xe   : > { %p856_p8 = pnand %p1035_p7, %p854_p6 }
  0x10   : > { %p857_p9 = pneg %p856_p8 }
  0x12   : > { %p862_p11 = pnand %p860_p10, %p857_p9 }
  0x14   : > { %865 = shalt.err (!%p862_p11)
}
  0x15   : > { %s866_s19 = scalar_lea.vmem %s231_s28, 1024  ;;  %p874_p1 = scmp.lt.s32.totalorder %s231_s28, %s231_s28 }
  0x16   : > { %p867_p12 = scmp.ne.s32.totalorder %s231_s28, %s866_s19  ;;  %p875_p4 = scmp.lt.s32.totalorder %s866_s19, %s866_s19 }
  0x18   : > { %p869_p13 = pnand %p867_p12, %p1035_p7  ;;  %p876_p2 = por %p875_p4, %p874_p1 }
  0x1a   : > { %p870_p0 = pneg %p869_p13 }
  0x1c   : > { %p877_p3 = pnand %p876_p2, %p870_p0 }
  0x1e   : > { %880 = shalt.err (!%p877_p3)
}
  0x1f   : > { %s956_s20 = smov 64   ;;  %s957_s21 = smov 4  }
  0x20   : > { %811 = dma.hbm_to_vmem [thread:$0]  (!%p1019_p5), %s1169_s3, 1024, %s231_s28, [#allocation5], %s956_s20, %s956_s20, %s957_s21  }
  0x21   : > { %s881_s9 = scalar_lea.hbm %s1167_s1, 128 }
  0x22   : > { %p882_p2 = scmp.ne.s32.totalorder %s1167_s1, %s881_s9  ;;  %p888_p8 = scmp.lt.u32.totalorder %s881_s9, %s1167_s1 }
  0x24   : > { %p884_p3 = pnand %p882_p2, %p1035_p7 }
  0x26   : > { %p885_p6 = pneg %p884_p3 }
  0x28   : > { %p890_p9 = pnand %p888_p8, %p885_p6 }
  0x2a   : > { %893 = shalt.err (!%p890_p9)
}
  0x2b   : > { %s894_s28 = scalar_lea.vmem %s1023_s30, 128  ;;  %p902_p13 = scmp.lt.s32.totalorder %s1023_s30, %s1023_s30 }
  0x2c   : > { %p895_p10 = scmp.ne.s32.totalorder %s1023_s30, %s894_s28  ;;  %p903_p0 = scmp.lt.s32.totalorder %s894_s28, %s894_s28 }
  0x2e   : > { %p897_p11 = pnand %p895_p10, %p1035_p7  ;;  %p904_p1 = por %p903_p0, %p902_p13 }
  0x30   : > { %p898_p12 = pneg %p897_p11 }
  0x32   : > { %p905_p4 = pnand %p904_p1, %p898_p12 }
  0x34   : > { %908 = shalt.err (!%p905_p4)
}
  0x35   : > { %808 = dma.hbm_to_vmem [thread:$0]  (!%p1019_p5), %s1167_s1, 128, %s1023_s30, [#allocation3], %s956_s20, %s956_s20, %s957_s21  }
  0x36   : > { %s909_s22 = scalar_lea.hbm %s1171_s5, 1024 }
  0x37   : > { %p910_p2 = scmp.ne.s32.totalorder %s1171_s5, %s909_s22  ;;  %p916_p8 = scmp.lt.u32.totalorder %s909_s22, %s1171_s5 }
  0x39   : > { %p912_p3 = pnand %p910_p2, %p1035_p7 }
  0x3b   : > { %p913_p6 = pneg %p912_p3 }
  0x3d   : > { %p918_p9 = pnand %p916_p8, %p913_p6 }
  0x3f   : > { %921 = shalt.err (!%p918_p9)
}
  0x40   : > { %s922_s30 = scalar_lea.vmem %s1025_s10, 1024  ;;  %p930_p13 = scmp.lt.s32.totalorder %s1025_s10, %s1025_s10 }
  0x41   : > { %p923_p10 = scmp.ne.s32.totalorder %s1025_s10, %s922_s30  ;;  %p931_p0 = scmp.lt.s32.totalorder %s922_s30, %s922_s30 }
  0x43   : > { %p925_p11 = pnand %p923_p10, %p1035_p7  ;;  %p932_p1 = por %p931_p0, %p930_p13 }
  0x45   : > { %p926_p12 = pneg %p925_p11 }
  0x47   : > { %p933_p4 = pnand %p932_p1, %p926_p12 }
  0x49   : > { %936 = shalt.err (!%p933_p4)
}
  0x4a   : > { %814 = dma.hbm_to_vmem [thread:$0]  (!%p1019_p5), %s1171_s5, 1024, %s1025_s10, [#allocation5], %s956_s20, %s956_s20, %s957_s21  }
  0x4b   : > { %p1179_p2 = scmp.ne.s32.totalorder %s1176_s26, 0 }
  0x4c   : > { %p1180_p7 = scmp.eq.s32.totalorder (!%p1179_p2), %s1006_s25, 0 }
  0x4d   : > { %272 = sbr.rel (%p1179_p2) target bundleno = 748 (0x2ec), region = 48 }
  0x54   : > { %942 = dma.done.wait (%p1180_p7), [#allocation3], 128   ;;  %p1181_p3 = pmov %p1180_p7 }
  0x56   : > { %944 = vsyncadd (%p1181_p3), [#allocation3], 4294967168  ;;  %p1182_p6 = pmov %p1181_p3 }
  0x57   : > { %p1183_p8 = pmov %p1181_p3 }
  0x58   : > { %946 = dma.done.wait (%p1182_p6), [#allocation5], 2048  }
  0x59   : > { %948 = vsyncadd (%p1183_p8), [#allocation5], 4294965248  ;;  %p310_p9 = scmp.lt.s32.totalorder %s1006_s25, 1  ;;  %v958_v0 = vmov 0.0   ;;  %vm959_vm0 = vmmov 0   ;;  %v836_v1 = vld [vmem:[#allocation2] sm:$0xff]  }
  0x5a   : > { %747 = vmatprep.subr.bf16.mxu0 %v958_v0  ;;  %749 = vmatprep.mubr.msk.bf16.mxu0 %vm959_vm0, %v958_v0  ;;  %vm336_vm1 = vcmask 130048   ;;  %v837_v4 = vld [vmem:[#allocation4] sm:$0xff]   ;;  %v838_v5 = vld [vmem:[#allocation4 + $0x8] sm:$0xff]   ;;  %v839_v6 = vld [vmem:[#allocation4 + $0x10] sm:$0xff]  }
  0x5b   : > { %s1185_s25 = smov (!%p310_p9, %s1006_s25), 1  ;;  %753 = vmatprep.subr.bf16.mxu1 %v958_v0  ;;  %769 = vmatprep.mubr.msk.bf16.mxu1 %vm959_vm0, %v958_v0  ;;  %v840_v7 = vld [vmem:[#allocation4 + $0x18] sm:$0xff]   ;;  %v841_v8 = vld [vmem:[#allocation4 + $0x20] sm:$0xff]   ;;  %v842_v9 = vld [vmem:[#allocation4 + $0x28] sm:$0xff]  }
  0x5c   : > { %s702_s26 = sshll.u32 %s1185_s25, 3  ;;  %748 = vmatpush3.bf16.msra.mxu0 %v836_v1  ;;  %754 = vmatpush3.bf16.msra.mxu1 %v837_v4  ;;  %v843_v10 = vld [vmem:[#allocation4 + $0x30] sm:$0xff]   ;;  %v844_v11 = vld [vmem:[#allocation4 + $0x38] sm:$0xff]   ;;  %v845_v12 = vld [vmem:[#allocation6] sm:$0xff]  }
  0x5d   : > { %s313_s16 = scalar_lea.vmem %s1166_s0, %s702_s26  ;;  %773 = vmatprep.subr.bf16.mxu0 %v958_v0  ;;  %755 = vmatprep.subr.bf16.mxu1 %v958_v0  ;;  %v846_v13 = vld [vmem:[#allocation6 + $0x8] sm:$0xff]   ;;  %v847_v14 = vld [vmem:[#allocation6 + $0x10] sm:$0xff]   ;;  %v848_v15 = vld [vmem:[#allocation6 + $0x18] sm:$0xff]   ;;  %s317_s19 = scalar_lea.vmem %s1173_s7, %s702_s26 }
  0x5e   : > { %v319_v2 = vld [vmem:[%s313_s16] sm:$0xff]  ;;  %v849_v16 = vld [vmem:[#allocation6 + $0x20] sm:$0xff]   ;;  %v850_v17 = vld [vmem:[#allocation6 + $0x28] sm:$0xff]  }
  0x5f   : > { %v323_v3 = vpack.c.bf16 %v319_v2, %v319_v2  ;;  %v704_v18 = vld [vmem:[%s1168_s2] ss:$0 sm:$0xff]  ;;  %v851_v26 = vld [vmem:[#allocation6 + $0x30] sm:$0xff]  }
  0x60   : > { %756 = vmatpush3.bf16.msra.mxu1 %v838_v5  ;;  %v852_v27 = vld [vmem:[#allocation6 + $0x38] sm:$0xff]  }
  0x61   : > { %750 = vmatmul.mubr.msk.bf16.vlgmr.msra.gmra.mrb[0].mxu0 %vm336_vm1, %v323_v3  ;;  %757 = vmatprep.subr.bf16.mxu1 %v958_v0  ;;  %v707_v28 = vld [vmem:[%s1170_s4] ss:$0 sm:$0xff] }
  0x62   : > { %789 = vmatprep.mubr.msk.bf16.mxu0 %vm959_vm0, %v958_v0  ;;  %774 = vmatpush3.bf16.msra.mxu0 %v845_v12  ;;  %v716_v36 = vld [vmem:[%s1172_s6] ss:$0 sm:$0xff] }
  0x63   : > { %775 = vmatprep.subr.bf16.mxu0 %v958_v0 }
  0x64   : > { %758 = vmatpush3.bf16.msra.mxu1 %v839_v6 }
  0x65   : > { %759 = vmatprep.subr.bf16.mxu1 %v958_v0 }
  0x66   : > { %776 = vmatpush3.bf16.msra.mxu0 %v846_v13 }
  0x67   : > { %777 = vmatprep.subr.bf16.mxu0 %v958_v0 }
  0x68   : > { %760 = vmatpush3.bf16.msra.mxu1 %v840_v7 }
  0x69   : > { %761 = vmatprep.subr.bf16.mxu1 %v958_v0 }
  0x6a   : > { %778 = vmatpush3.bf16.msra.mxu0 %v847_v14 }
  0x6b   : > { %779 = vmatprep.subr.bf16.mxu0 %v958_v0 }
  0x6c   : > { %762 = vmatpush3.bf16.msra.mxu1 %v841_v8 }
  0x6d   : > { %763 = vmatprep.subr.bf16.mxu1 %v958_v0 }
  0x6e   : > { %780 = vmatpush3.bf16.msra.mxu0 %v848_v15 }
  0x6f   : > { %781 = vmatprep.subr.bf16.mxu0 %v958_v0 }
  0x70   : > { %764 = vmatpush3.bf16.msra.mxu1 %v842_v9 }
  0x71   : > { %765 = vmatprep.subr.bf16.mxu1 %v958_v0 }
  0x72   : > { %782 = vmatpush3.bf16.msra.mxu0 %v849_v16 }
  0x73   : > { %783 = vmatprep.subr.bf16.mxu0 %v958_v0 }
  0x74   : > { %766 = vmatpush3.bf16.msra.mxu1 %v843_v10 }
  0x75   : > { %767 = vmatprep.subr.bf16.mxu1 %v958_v0 }
  0x76   : > { %784 = vmatpush3.bf16.msra.mxu0 %v850_v17 }
  0x77   : > { %785 = vmatprep.subr.bf16.mxu0 %v958_v0 }
  0x78   : > { %768 = vmatpush3.bf16.msra.mxu1 %v844_v11 }
  0x7a   : > { %786 = vmatpush3.bf16.msra.mxu0 %v851_v26 }
  0x7b   : > { %787 = vmatprep.subr.bf16.mxu0 %v958_v0 }
  0x7e   : > { %788 = vmatpush3.bf16.msra.mxu0 %v852_v27 }
 0x134   : > { %v374_v19 = vpop.f32.mrb[0].mxu0 }
 0x135   : > { %v375_v20 = vadd.f32 %v704_v18, %v374_v19  ;;  %v751_v21 = vpop.f32.mrb[1].mxu0 }
 0x136   : > { %v377_v22 = vpop.f32.mrb[2].mxu0 }
 0x137   : > { %v380_v23 = vmax.f32 %v375_v20, 0.0  ;;  %v752_v24 = vpop.f32.mrb[3].mxu0 }
 0x139   : > { %v398_v25 = vpack.c.bf16 %v380_v23, %v380_v23 }
 0x13b   : > { %770 = vmatmul.mubr.bf16.vlgmr.msra.gmra.mrb[0].mxu1 %v398_v25 }
 0x20e   : > { %v487_v29 = vpop.f32.mrb[0].mxu1 }
 0x20f   : > { %v488_v30 = vadd.f32 %v707_v28, %v487_v29  ;;  %v771_v31 = vpop.f32.mrb[1].mxu1 }
 0x210   : > { %v490_v32 = vpop.f32.mrb[2].mxu1 }
 0x211   : > { %v493_v33 = vmax.f32 %v488_v30, 0.0  ;;  %v772_v34 = vpop.f32.mrb[3].mxu1 }
 0x213   : > { %v511_v35 = vpack.c.bf16 %v493_v33, %v493_v33 }
 0x215   : > { %790 = vmatmul.mubr.bf16.vlgmr.msra.gmra.mrb[4].mxu0 %v511_v35 }
 0x2e8   : > { %v600_v37 = vpop.f32.mrb[4].mxu0 }
 0x2e9   : > { %v601_v38 = vadd.f32 %v716_v36, %v600_v37  ;;  %v791_v39 = vpop.f32.mrb[5].mxu0 }
 0x2ea   : > { %v603_v40 = vpop.f32.mrb[6].mxu0 }
 0x2eb   : > { %606 = vst [vmem:[%s317_s19] sm:$0xff] %v601_v38  ;;  %v792_v41 = vpop.f32.mrb[7].mxu0 }
 0x2ec PF: > { %s19_s24 = sadd.s32 1, %s951_s24  }
 0x2ed   : > { %p16_p5 = scmp.ge.s32.totalorder %s19_s24, 4  }
 0x2ef   :  { %18 = sbr.rel (!%p16_p5) target bundleno = 2 (0x2), region = 91 }
 0x2f6   :  { %626 = vsyncpa [#allocation3], 1 }
 0x2f7   :  { %628 = vsyncpa [#allocation3 + $0x1], 1 }
 0x2f8   :  { %629 = vsyncpa [#allocation5], 1 }

</bundles_post_ra>
